<compile_context>
chip_gen: v6e
topology: v6e:2x2x1
jax: 0.10.0
libtpu: 0.0.40
codegen_flags: <defaults>
</compile_context>

<pallas_src>
from functools import partial

import jax
import jax.numpy as jnp
from jax.experimental import pallas as pl
from jax.experimental.pallas import tpu as pltpu

LN_EPS = 1e-5

# Below this channel count the per-tap (C, C) matmuls are too small to be worth the MXU
# push/pop latency; use VPU broadcast multiply-adds instead.
_MXU_MIN_CHANNELS = 32


def residual_cnn_block_kernel(x_ref, w_ref, p_ref, o_ref, xp_ref, *, L, K, C, use_mxu):
    """One batch tile per grid step, NCL layout (channels on sublanes, L on lanes).

    x_ref : (Bt, C, L)       input tile; also the residual path (no duplicate input)
    w_ref : (C, K*C)         conv taps, w_ref[co, k*C + ci] == torch_w[co, ci, k]
    p_ref : (C, 3)           packed per-channel params: [:,0]=conv bias, [:,1]=LN gamma,
                             [:,2]=LN beta
    o_ref : (Bt, C, L)       output tile
    xp_ref: (C, L + 2*pad)   VMEM scratch holding the zero-padded row for the conv taps
    """
    pad = (K - 1) // 2
    b_tile = x_ref.shape[0]

    bias = p_ref[:, 0:1]      # (C, 1), broadcasts along lanes (L)
    gamma = p_ref[:, 1:2]
    beta = p_ref[:, 2:3]

    # Zero the halo columns of the padded scratch once per grid step; the interior is
    # fully overwritten for every batch element below ("same" padding done in-kernel).
    if pad > 0:
        halo = jnp.zeros((C, pad), jnp.float32)
        xp_ref[:, :pad] = halo
        xp_ref[:, pad + L:] = halo

    if not use_mxu:
        # Hoist the per-(tap, c_in) weight columns out of the batch loop.
        w_cols = [w_ref[:, j:j + 1] for j in range(K * C)]   # each (C, 1)

    for b in range(b_tile):           # static unroll over the batch tile
        x = x_ref[b]                  # (C, L) — conv input AND residual
        xp_ref[:, pad:pad + L] = x

        if use_mxu:
            # Single fused im2col dot on the MXU: (C, K*C) @ (K*C, L).
            stacked = jnp.concatenate([xp_ref[:, k:k + L] for k in range(K)], axis=0)
            acc = jnp.dot(w_ref[...], stacked, preferred_element_type=jnp.float32)
        else:
            # Pure VPU: K*C broadcast multiply-adds of (C,1) x (1,L) outer products.
            acc = jnp.zeros((C, L), jnp.float32)
            for k in range(K):
                for ci in range(C):
                    acc = acc + w_cols[k * C + ci] * xp_ref[ci:ci + 1, k:k + L]
        acc = acc + bias

        # LayerNorm over channels (sublane axis), single-pass statistics.
        mean = jnp.mean(acc, axis=0, keepdims=True)                    # (1, L)
        var = jnp.mean(acc * acc, axis=0, keepdims=True) - mean * mean
        y = (acc - mean) * jax.lax.rsqrt(var + LN_EPS)
        y = y * gamma + beta

        # Mish: y * tanh(softplus(y)); softplus via numerically stable logaddexp.
        out = y * jnp.tanh(jnp.logaddexp(y, 0.0))

        # Residual add straight from the already-loaded input block.
        o_ref[b] = (x + out).astype(o_ref.dtype)


def _pick_batch_tile(N, C, L):
    """Batch elements per grid step: amortize per-step pipeline overhead, keep >= 2 grid
    steps when possible (v7x has 2 TensorCores), stay under the scoped-VMEM budget."""
    if N <= 1:
        return 1
    bytes_per_elem = C * L * 4                              # f32
    vmem_budget = 24 * 1024 * 1024                          # headroom under ~32 MiB scoped
    max_fit = max(1, vmem_budget // (4 * bytes_per_elem))   # in + out, double-buffered
    target = min(max(1, N // 2), max_fit)
    for bt in range(target, 0, -1):
        if N % bt == 0:
            return bt
    return 1


def residual_cnn_block(x_ncl, conv_w, conv_b, ln_w, ln_b):
    """x_ncl: (N, C, L) float32 (PyTorch Conv1d layout). No activation pad / transpose in
    the wrapper — the kernel consumes and produces NCL directly."""
    N, C, L = x_ncl.shape
    K = conv_w.shape[-1]
    assert K % 2 == 1, "only odd kernel sizes give 'same' padding here"
    pad = (K - 1) // 2

    # Parameter-only reshapes (negligible next to the activation stream).
    w_flat = jnp.transpose(conv_w, (0, 2, 1)).reshape(C, K * C).astype(jnp.float32)
    params = jnp.stack([conv_b, ln_w, ln_b], axis=1).astype(jnp.float32)   # (C, 3)
    x_f32 = x_ncl.astype(jnp.float32)
    # NOTE: I/O could be bf16 (halves HBM bytes, biggest win on v5e) with f32 math kept
    # inside the kernel; left as f32 here to match the f32 reference bit-for-bit-ish.

    b_tile = _pick_batch_tile(N, C, L)
    assert N % b_tile == 0
    use_mxu = C >= _MXU_MIN_CHANNELS

    return pl.pallas_call(
        partial(residual_cnn_block_kernel, L=L, K=K, C=C, use_mxu=use_mxu),
        out_shape=jax.ShapeDtypeStruct((N, C, L), jnp.float32),
        grid=(N // b_tile,),
        in_specs=[
            pl.BlockSpec((b_tile, C, L), lambda n: (n, 0, 0)),
            pl.BlockSpec((C, K * C), lambda n: (0, 0)),
            pl.BlockSpec((C, 3), lambda n: (0, 0)),
        ],
        out_specs=pl.BlockSpec((b_tile, C, L), lambda n: (n, 0, 0)),
        scratch_shapes=[pltpu.VMEM((C, L + 2 * pad), jnp.float32)],
        compiler_params=pltpu.CompilerParams(dimension_semantics=("parallel",)),
        # For model-sized (C, L) on v7x (64 MiB VMEM): shrink b_tile / add an L-tile grid
        # axis with a (K-1) halo and raise vmem_limit_bytes here as needed.
    )(x_f32, w_flat, params)


def reference(x_ncl, conv_w, conv_b, ln_w, ln_b):
    """Pure-JAX reference matching the PyTorch ResidualCNNBlock forward."""
    K = conv_w.shape[-1]
    pad = (K - 1) // 2
    out = jax.lax.conv_general_dilated(
        x_ncl, conv_w, window_strides=(1,), padding=[(pad, pad)],
        dimension_numbers=("NCH", "OIH", "NCH"))
    out = out + conv_b[None, :, None]
    out = jnp.transpose(out, (0, 2, 1))
    mean = out.mean(-1, keepdims=True)
    var = ((out - mean) ** 2).mean(-1, keepdims=True)
    y = (out - mean) / jnp.sqrt(var + LN_EPS)
    y = y * ln_w + ln_b
    y = y * jnp.tanh(jax.nn.softplus(y))
    return x_ncl + jnp.transpose(y, (0, 2, 1))


if __name__ == "__main__":
    # Small shapes consistent with the module: batch=2, channels=4, seq length=16, K=3.
    N, C, L, K = 2, 4, 16, 3

    key = jax.random.PRNGKey(0)
    kx, kw, kb, kg, kbeta = jax.random.split(key, 5)

    x = jax.random.normal(kx, (N, C, L), dtype=jnp.float32)

    # Deterministic parameter init (PyTorch-ish uniform scale for the conv).
    fan_in = C * K
    bound = 1.0 / (fan_in ** 0.5)
    conv_w = jax.random.uniform(kw, (C, C, K), jnp.float32, -bound, bound)
    conv_b = jax.random.uniform(kb, (C,), jnp.float32, -bound, bound)
    # LayerNorm default init is weight=1, bias=0; perturb slightly to exercise the affine path.
    ln_w = jnp.ones((C,), jnp.float32) + 0.05 * jax.random.normal(kg, (C,), jnp.float32)
    ln_b = 0.05 * jax.random.normal(kbeta, (C,), jnp.float32)

    out = residual_cnn_block(x, conv_w, conv_b, ln_w, ln_b)
    out = jax.block_until_ready(out)

    ref = reference(x, conv_w, conv_b, ln_w, ln_b)
    assert out.shape == (N, C, L)
    assert jnp.allclose(out, ref, rtol=1e-5, atol=1e-5), (
        f"max abs err = {jnp.max(jnp.abs(out - ref))}")

    print("KERNEL_OK")
</pallas_src>

<mosaic_0001>
module attributes {stable_mosaic.version = 11 : i64} {
  func.func @residual_cnn_block_kernel(%arg0: i32, %arg1: memref<1x4x16xf32, #tpu.memory_space<vmem>>, %arg2: memref<4x12xf32, #tpu.memory_space<vmem>>, %arg3: memref<4x3xf32, #tpu.memory_space<vmem>>, %arg4: memref<1x4x16xf32, #tpu.memory_space<vmem>>, %arg5: memref<4x18xf32, #tpu.memory_space<vmem>>) attributes {dimension_semantics = [#tpu.dimension_semantics<parallel>], iteration_bounds = array<i64: 2>, scalar_prefetch = 0 : i64, scratch_operands = 1 : i64, tpu.core_type = #tpu.core_type<tc>, window_params = [{transform_indices = @transform_0, window_bounds = array<i64: 1, 4, 16>}, {pipeline_mode = #tpu.pipeline_mode<synchronous>, transform_indices = @transform_1, window_bounds = array<i64: 4, 12>}, {pipeline_mode = #tpu.pipeline_mode<synchronous>, transform_indices = @transform_2, window_bounds = array<i64: 4, 3>}, {transform_indices = @transform_3, window_bounds = array<i64: 1, 4, 16>}]} {
    %c0 = arith.constant 0 : index
    %c0_0 = arith.constant 0 : index
    %0 = vector.load %arg3[%c0, %c0_0] : memref<4x3xf32, #tpu.memory_space<vmem>>, vector<4x1xf32>
    %c0_1 = arith.constant 0 : index
    %c1 = arith.constant 1 : index
    %1 = vector.load %arg3[%c0_1, %c1] : memref<4x3xf32, #tpu.memory_space<vmem>>, vector<4x1xf32>
    %c0_2 = arith.constant 0 : index
    %c2 = arith.constant 2 : index
    %2 = vector.load %arg3[%c0_2, %c2] : memref<4x3xf32, #tpu.memory_space<vmem>>, vector<4x1xf32>
    %cst = arith.constant 0.000000e+00 : f32
    %3 = vector.broadcast %cst : f32 to vector<4x1xf32>
    %c0_3 = arith.constant 0 : index
    %c0_4 = arith.constant 0 : index
    %4 = vector.load %arg5[%c0_3, %c0_4] : memref<4x18xf32, #tpu.memory_space<vmem>>, vector<4x1xf32>
    tpu.vector_store %arg5[%c0_3, %c0_4], %3 {strides = array<i32>} : memref<4x18xf32, #tpu.memory_space<vmem>>, vector<4x1xf32>,
    %c0_5 = arith.constant 0 : index
    %c17 = arith.constant 17 : index
    %5 = vector.load %arg5[%c0_5, %c17] : memref<4x18xf32, #tpu.memory_space<vmem>>, vector<4x1xf32>
    tpu.vector_store %arg5[%c0_5, %c17], %3 {strides = array<i32>} : memref<4x18xf32, #tpu.memory_space<vmem>>, vector<4x1xf32>,
    %c0_6 = arith.constant 0 : index
    %c0_7 = arith.constant 0 : index
    %6 = vector.load %arg2[%c0_6, %c0_7] : memref<4x12xf32, #tpu.memory_space<vmem>>, vector<4x1xf32>
    %c0_8 = arith.constant 0 : index
    %c1_9 = arith.constant 1 : index
    %7 = vector.load %arg2[%c0_8, %c1_9] : memref<4x12xf32, #tpu.memory_space<vmem>>, vector<4x1xf32>
    %c0_10 = arith.constant 0 : index
    %c2_11 = arith.constant 2 : index
    %8 = vector.load %arg2[%c0_10, %c2_11] : memref<4x12xf32, #tpu.memory_space<vmem>>, vector<4x1xf32>
    %c0_12 = arith.constant 0 : index
    %c3 = arith.constant 3 : index
    %9 = vector.load %arg2[%c0_12, %c3] : memref<4x12xf32, #tpu.memory_space<vmem>>, vector<4x1xf32>
    %c0_13 = arith.constant 0 : index
    %c4 = arith.constant 4 : index
    %10 = vector.load %arg2[%c0_13, %c4] : memref<4x12xf32, #tpu.memory_space<vmem>>, vector<4x1xf32>
    %c0_14 = arith.constant 0 : index
    %c5 = arith.constant 5 : index
    %11 = vector.load %arg2[%c0_14, %c5] : memref<4x12xf32, #tpu.memory_space<vmem>>, vector<4x1xf32>
    %c0_15 = arith.constant 0 : index
    %c6 = arith.constant 6 : index
    %12 = vector.load %arg2[%c0_15, %c6] : memref<4x12xf32, #tpu.memory_space<vmem>>, vector<4x1xf32>
    %c0_16 = arith.constant 0 : index
    %c7 = arith.constant 7 : index
    %13 = vector.load %arg2[%c0_16, %c7] : memref<4x12xf32, #tpu.memory_space<vmem>>, vector<4x1xf32>
    %c0_17 = arith.constant 0 : index
    %c8 = arith.constant 8 : index
    %14 = vector.load %arg2[%c0_17, %c8] : memref<4x12xf32, #tpu.memory_space<vmem>>, vector<4x1xf32>
    %c0_18 = arith.constant 0 : index
    %c9 = arith.constant 9 : index
    %15 = vector.load %arg2[%c0_18, %c9] : memref<4x12xf32, #tpu.memory_space<vmem>>, vector<4x1xf32>
    %c0_19 = arith.constant 0 : index
    %c10 = arith.constant 10 : index
    %16 = vector.load %arg2[%c0_19, %c10] : memref<4x12xf32, #tpu.memory_space<vmem>>, vector<4x1xf32>
    %c0_20 = arith.constant 0 : index
    %c11 = arith.constant 11 : index
    %17 = vector.load %arg2[%c0_20, %c11] : memref<4x12xf32, #tpu.memory_space<vmem>>, vector<4x1xf32>
    %c0_21 = arith.constant 0 : index
    %c0_22 = arith.constant 0 : index
    %c0_23 = arith.constant 0 : index
    %18 = vector.load %arg1[%c0_21, %c0_22, %c0_23] : memref<1x4x16xf32, #tpu.memory_space<vmem>>, vector<1x4x16xf32>
    %19 = vector.shape_cast %18 : vector<1x4x16xf32> to vector<4x16xf32>
    %c0_24 = arith.constant 0 : index
    %c1_25 = arith.constant 1 : index
    %20 = vector.load %arg5[%c0_24, %c1_25] : memref<4x18xf32, #tpu.memory_space<vmem>>, vector<4x16xf32>
    tpu.vector_store %arg5[%c0_24, %c1_25], %19 {strides = array<i32>} : memref<4x18xf32, #tpu.memory_space<vmem>>, vector<4x16xf32>,
    %cst_26 = arith.constant 0.000000e+00 : f32
    %21 = vector.broadcast %cst_26 : f32 to vector<4x16xf32>
    %c0_27 = arith.constant 0 : index
    %c0_28 = arith.constant 0 : index
    %22 = vector.load %arg5[%c0_27, %c0_28] : memref<4x18xf32, #tpu.memory_space<vmem>>, vector<1x16xf32>
    %23 = vector.broadcast %6 : vector<4x1xf32> to vector<4x16xf32>
    %24 = vector.broadcast %22 : vector<1x16xf32> to vector<4x16xf32>
    %25 = arith.mulf %23, %24 : vector<4x16xf32>
    %26 = arith.addf %21, %25 : vector<4x16xf32>
    %c1_29 = arith.constant 1 : index
    %c0_30 = arith.constant 0 : index
    %27 = vector.load %arg5[%c1_29, %c0_30] : memref<4x18xf32, #tpu.memory_space<vmem>>, vector<1x16xf32>
    %28 = vector.broadcast %7 : vector<4x1xf32> to vector<4x16xf32>
    %29 = vector.broadcast %27 : vector<1x16xf32> to vector<4x16xf32>
    %30 = arith.mulf %28, %29 : vector<4x16xf32>
    %31 = arith.addf %26, %30 : vector<4x16xf32>
    %c2_31 = arith.constant 2 : index
    %c0_32 = arith.constant 0 : index
    %32 = vector.load %arg5[%c2_31, %c0_32] : memref<4x18xf32, #tpu.memory_space<vmem>>, vector<1x16xf32>
    %33 = vector.broadcast %8 : vector<4x1xf32> to vector<4x16xf32>
    %34 = vector.broadcast %32 : vector<1x16xf32> to vector<4x16xf32>
    %35 = arith.mulf %33, %34 : vector<4x16xf32>
    %36 = arith.addf %31, %35 : vector<4x16xf32>
    %c3_33 = arith.constant 3 : index
    %c0_34 = arith.constant 0 : index
    %37 = vector.load %arg5[%c3_33, %c0_34] : memref<4x18xf32, #tpu.memory_space<vmem>>, vector<1x16xf32>
    %38 = vector.broadcast %9 : vector<4x1xf32> to vector<4x16xf32>
    %39 = vector.broadcast %37 : vector<1x16xf32> to vector<4x16xf32>
    %40 = arith.mulf %38, %39 : vector<4x16xf32>
    %41 = arith.addf %36, %40 : vector<4x16xf32>
    %c0_35 = arith.constant 0 : index
    %c1_36 = arith.constant 1 : index
    %42 = vector.load %arg5[%c0_35, %c1_36] : memref<4x18xf32, #tpu.memory_space<vmem>>, vector<1x16xf32>
    %43 = vector.broadcast %10 : vector<4x1xf32> to vector<4x16xf32>
    %44 = vector.broadcast %42 : vector<1x16xf32> to vector<4x16xf32>
    %45 = arith.mulf %43, %44 : vector<4x16xf32>
    %46 = arith.addf %41, %45 : vector<4x16xf32>
    %c1_37 = arith.constant 1 : index
    %c1_38 = arith.constant 1 : index
    %47 = vector.load %arg5[%c1_37, %c1_38] : memref<4x18xf32, #tpu.memory_space<vmem>>, vector<1x16xf32>
    %48 = vector.broadcast %11 : vector<4x1xf32> to vector<4x16xf32>
    %49 = vector.broadcast %47 : vector<1x16xf32> to vector<4x16xf32>
    %50 = arith.mulf %48, %49 : vector<4x16xf32>
    %51 = arith.addf %46, %50 : vector<4x16xf32>
    %c2_39 = arith.constant 2 : index
    %c1_40 = arith.constant 1 : index
    %52 = vector.load %arg5[%c2_39, %c1_40] : memref<4x18xf32, #tpu.memory_space<vmem>>, vector<1x16xf32>
    %53 = vector.broadcast %12 : vector<4x1xf32> to vector<4x16xf32>
    %54 = vector.broadcast %52 : vector<1x16xf32> to vector<4x16xf32>
    %55 = arith.mulf %53, %54 : vector<4x16xf32>
    %56 = arith.addf %51, %55 : vector<4x16xf32>
    %c3_41 = arith.constant 3 : index
    %c1_42 = arith.constant 1 : index
    %57 = vector.load %arg5[%c3_41, %c1_42] : memref<4x18xf32, #tpu.memory_space<vmem>>, vector<1x16xf32>
    %58 = vector.broadcast %13 : vector<4x1xf32> to vector<4x16xf32>
    %59 = vector.broadcast %57 : vector<1x16xf32> to vector<4x16xf32>
    %60 = arith.mulf %58, %59 : vector<4x16xf32>
    %61 = arith.addf %56, %60 : vector<4x16xf32>
    %c0_43 = arith.constant 0 : index
    %c2_44 = arith.constant 2 : index
    %62 = vector.load %arg5[%c0_43, %c2_44] : memref<4x18xf32, #tpu.memory_space<vmem>>, vector<1x16xf32>
    %63 = vector.broadcast %14 : vector<4x1xf32> to vector<4x16xf32>
    %64 = vector.broadcast %62 : vector<1x16xf32> to vector<4x16xf32>
    %65 = arith.mulf %63, %64 : vector<4x16xf32>
    %66 = arith.addf %61, %65 : vector<4x16xf32>
    %c1_45 = arith.constant 1 : index
    %c2_46 = arith.constant 2 : index
    %67 = vector.load %arg5[%c1_45, %c2_46] : memref<4x18xf32, #tpu.memory_space<vmem>>, vector<1x16xf32>
    %68 = vector.broadcast %15 : vector<4x1xf32> to vector<4x16xf32>
    %69 = vector.broadcast %67 : vector<1x16xf32> to vector<4x16xf32>
    %70 = arith.mulf %68, %69 : vector<4x16xf32>
    %71 = arith.addf %66, %70 : vector<4x16xf32>
    %c2_47 = arith.constant 2 : index
    %c2_48 = arith.constant 2 : index
    %72 = vector.load %arg5[%c2_47, %c2_48] : memref<4x18xf32, #tpu.memory_space<vmem>>, vector<1x16xf32>
    %73 = vector.broadcast %16 : vector<4x1xf32> to vector<4x16xf32>
    %74 = vector.broadcast %72 : vector<1x16xf32> to vector<4x16xf32>
    %75 = arith.mulf %73, %74 : vector<4x16xf32>
    %76 = arith.addf %71, %75 : vector<4x16xf32>
    %c3_49 = arith.constant 3 : index
    %c2_50 = arith.constant 2 : index
    %77 = vector.load %arg5[%c3_49, %c2_50] : memref<4x18xf32, #tpu.memory_space<vmem>>, vector<1x16xf32>
    %78 = vector.broadcast %17 : vector<4x1xf32> to vector<4x16xf32>
    %79 = vector.broadcast %77 : vector<1x16xf32> to vector<4x16xf32>
    %80 = arith.mulf %78, %79 : vector<4x16xf32>
    %81 = arith.addf %76, %80 : vector<4x16xf32>
    %82 = vector.broadcast %0 : vector<4x1xf32> to vector<4x16xf32>
    %83 = arith.addf %81, %82 : vector<4x16xf32>
    %cst_51 = arith.constant dense<0.000000e+00> : vector<16xf32>
    %84 = vector.multi_reduction <add>, %83, %cst_51 [0] : vector<4x16xf32> to vector<16xf32>
    %85 = vector.shape_cast %84 : vector<16xf32> to vector<1x16xf32>
    %cst_52 = arith.constant 4.000000e+00 : f32
    %86 = vector.broadcast %cst_52 : f32 to vector<1x16xf32>
    %87 = arith.divf %85, %86 : vector<1x16xf32>
    %88 = arith.mulf %83, %83 : vector<4x16xf32>
    %cst_53 = arith.constant dense<0.000000e+00> : vector<16xf32>
    %89 = vector.multi_reduction <add>, %88, %cst_53 [0] : vector<4x16xf32> to vector<16xf32>
    %90 = vector.shape_cast %89 : vector<16xf32> to vector<1x16xf32>
    %cst_54 = arith.constant 4.000000e+00 : f32
    %91 = vector.broadcast %cst_54 : f32 to vector<1x16xf32>
    %92 = arith.divf %90, %91 : vector<1x16xf32>
    %93 = arith.mulf %87, %87 : vector<1x16xf32>
    %94 = arith.subf %92, %93 : vector<1x16xf32>
    %95 = vector.broadcast %87 : vector<1x16xf32> to vector<4x16xf32>
    %96 = arith.subf %83, %95 : vector<4x16xf32>
    %cst_55 = arith.constant 9.99999974E-6 : f32
    %97 = vector.broadcast %cst_55 : f32 to vector<1x16xf32>
    %98 = arith.addf %94, %97 : vector<1x16xf32>
    %99 = math.rsqrt %98 : vector<1x16xf32>
    %100 = vector.broadcast %99 : vector<1x16xf32> to vector<4x16xf32>
    %101 = arith.mulf %96, %100 : vector<4x16xf32>
    %102 = vector.broadcast %1 : vector<4x1xf32> to vector<4x16xf32>
    %103 = arith.mulf %101, %102 : vector<4x16xf32>
    %104 = vector.broadcast %2 : vector<4x1xf32> to vector<4x16xf32>
    %105 = arith.addf %103, %104 : vector<4x16xf32>
    %cst_56 = arith.constant 0.000000e+00 : f32
    %106 = vector.broadcast %cst_56 : f32 to vector<4x16xf32>
    %107 = arith.maximumf %105, %106 : vector<4x16xf32>
    %108 = vector.broadcast %cst_56 : f32 to vector<4x16xf32>
    %109 = arith.subf %105, %108 : vector<4x16xf32>
    %110 = arith.cmpf one, %109, %109 : vector<4x16xf32>
    %111 = vector.broadcast %cst_56 : f32 to vector<4x16xf32>
    %112 = arith.addf %105, %111 : vector<4x16xf32>
    %113 = math.absf %109 : vector<4x16xf32>
    %cst_57 = arith.constant 0.000000e+00 : f32
    %114 = vector.broadcast %cst_57 : f32 to vector<4x16xf32>
    %115 = arith.subf %114, %113 : vector<4x16xf32>
    %116 = math.exp %115 : vector<4x16xf32>
    %117 = math.log1p %116 : vector<4x16xf32>
    %118 = arith.addf %107, %117 : vector<4x16xf32>
    %119 = arith.select %110, %112, %118 : vector<4x16xi1>, vector<4x16xf32>
    %120 = math.tanh %119 : vector<4x16xf32>
    %121 = arith.mulf %105, %120 : vector<4x16xf32>
    %122 = arith.addf %19, %121 : vector<4x16xf32>
    %c0_58 = arith.constant 0 : index
    %c0_59 = arith.constant 0 : index
    %c0_60 = arith.constant 0 : index
    %123 = vector.load %arg4[%c0_58, %c0_59, %c0_60] : memref<1x4x16xf32, #tpu.memory_space<vmem>>, vector<1x4x16xf32>
    %124 = vector.shape_cast %123 : vector<1x4x16xf32> to vector<4x16xf32>
    %125 = vector.shape_cast %122 : vector<4x16xf32> to vector<1x4x16xf32>
    tpu.vector_store %arg4[%c0_58, %c0_59, %c0_60], %125 {strides = array<i32>} : memref<1x4x16xf32, #tpu.memory_space<vmem>>, vector<1x4x16xf32>,
    return
  }
  func.func @transform_0(%arg0: i32) -> (i32, i32, i32) {
    %c0_i32 = arith.constant 0 : i32
    %c0_i32_0 = arith.constant 0 : i32
    %c0_i32_1 = arith.constant 0 : i32
    return %arg0, %c0_i32, %c0_i32_0 : i32, i32, i32
  }
  func.func @transform_1(%arg0: i32) -> (i32, i32) {
    %c0_i32 = arith.constant 0 : i32
    %c0_i32_0 = arith.constant 0 : i32
    %c0_i32_1 = arith.constant 0 : i32
    return %c0_i32, %c0_i32_0 : i32, i32
  }
  func.func @transform_2(%arg0: i32) -> (i32, i32) {
    %c0_i32 = arith.constant 0 : i32
    %c0_i32_0 = arith.constant 0 : i32
    %c0_i32_1 = arith.constant 0 : i32
    return %c0_i32, %c0_i32_0 : i32, i32
  }
  func.func @transform_3(%arg0: i32) -> (i32, i32, i32) {
    %c0_i32 = arith.constant 0 : i32
    %c0_i32_0 = arith.constant 0 : i32
    %c0_i32_1 = arith.constant 0 : i32
    return %arg0, %c0_i32, %c0_i32_0 : i32, i32, i32
  }
}

</mosaic_0001>

<bundles_post_ra>
// kernel: tpu_custom_call.1
= control target key start
LH: loop header
LB: loop body
LE: loop exit
PB: predicated region body
PF: predicated region fallthrough
CT: control target
= control target key end

     0   :  { %8 = vsyncpa [#allocation4], 0  ;;  %s1008_s0 = inlined_call_operand.hbm [shape: f32[2,4,16], index: 0, kind: input, shape index: {}]   ;;  %s1009_s1 = inlined_call_operand.hbm [shape: f32[4,12], index: 1, kind: input, shape index: {}]   ;;  %s1010_s2 = inlined_call_operand.hbm [shape: f32[4,3], index: 2, kind: input, shape index: {}]   ;;  %s1011_s3 = inlined_call_operand.hbm [shape: f32[2,4,16], index: 3, kind: output, shape index: {}]  }
   0x1   :  { %10 = vsyncpa [#allocation4 + $0x1], 0 }
   0x2   :  { %11 = vsyncpa [#allocation7], 0 }
   0x3   :  { %12 = vsyncpa [#allocation5], 0 }
   0x4   :  { %14 = vsyncpa [#allocation5 + $0x1], 0  ;;  %s832_s12 = smov 0   ;;  %s834_s13 = smov 0  }
   0x5   :  { %s836_s14 = smov 0   ;;  %s838_s15 = smov 0  }
   0x6 LB: > { %s853_s16 = sadd.s32 4294967295, %s790_s15   ;;  %s515_s17 = sadd.s32 4294967294, %s790_s15   ;;  %s790_s15 = sphi %s838_s15, %s1033_s15   ;;  %s786_s14 = sphi %s836_s14, %s1032_s14   ;;  %s782_s13 = sphi %s834_s13, %s1031_s13   ;;  %s778_s12 = sphi %s832_s12, %s1030_s12  }
   0x7   : > { %p40_p0 = scmp.ne.s32.totalorder %s782_s13, %s778_s12  ;;  %p1012_p1 = scmp.eq.s32.totalorder %s853_s16, 0 }
   0x8   : > { %p112_p3 = scmp.eq.s32.totalorder %s515_s17, 1  ;;  %p516_p5 = scmp.ge.s32.totalorder %s790_s15, 1 }
   0x9   : > { %p862_p4 = por %p1012_p1, %p40_p0  ;;  %p119_p7 = scmp.lt.s32.totalorder %s790_s15, 3 }
   0xa   : > { %p867_p6 = por %p112_p3, %p40_p0  ;;  %s792_s21 = smov [#allocation6]  }
   0xb   : > { %s1016_s18 = scalar_select %p862_p4, 1, 0 }
   0xc   : > { %s1017_s19 = scalar_select %p867_p6, 1, 0 }
   0xd   : > { %p872_p8 = pnand %p516_p5, %p119_p7  ;;  %s132_s22 = sshll.u32 %s792_s21, 4  ;;  %s133_s22 = int_to_ptr.vmem [resolvable:$true] %s132_s22 }
   0xe   : > { %s793_s23 = smov [#allocation8]   ;;  %s886_s26 = sadd.s32 1, %s790_s15  }
   0xf   : > { %s1018_s20 = scalar_select %p872_p8, 1, 0 }
  0x10   : > { %p547_p10 = pneg %p872_p8  ;;  %s143_s24 = sshll.u32 %s793_s23, 4  ;;  %s144_s24 = int_to_ptr.vmem [resolvable:$true] %s143_s24 }
  0x11   : > { %s24_s27 = ssub.s32 %s790_s15, %s886_s26  ;;  %s653_s28 = scalar_lea.vmem %s133_s22, 64 }
  0x12   : > { %p881_p11 = pnand %p547_p10, %p1012_p1  ;;  %p654_p13 = scmp.ne.s32.totalorder %s133_s22, %s653_s28 }
  0x13   : > { %p661_p5 = scmp.lt.s32.totalorder %s133_s22, %s133_s22  ;;  %p662_p7 = scmp.lt.s32.totalorder %s653_s28, %s653_s28 }
  0x14   : > { %p644_p12 = pneg %p881_p11 }
  0x15   : > { %p663_p10 = por %p662_p7, %p661_p5 }
  0x16   : > { %p656_p0 = pnand %p654_p13, %p644_p12 }
  0x18   : > { %p657_p3 = pneg %p656_p0 }
  0x1a   : > { %p664_p9 = pnand %p663_p10, %p657_p3 }
  0x1c   : > { %667 = shalt.err (!%p664_p9)
}
  0x1d   : > { %550 = dma.hbm_to_vmem [thread:$0]  (!%p881_p11), %s1009_s1, 64, %s133_s22, [#allocation7]  }
  0x1e   : > { %s679_s4 = scalar_lea.vmem %s144_s24, 64  ;;  %p687_p13 = scmp.lt.s32.totalorder %s144_s24, %s144_s24 }
  0x1f   : > { %p680_p1 = scmp.ne.s32.totalorder %s144_s24, %s679_s4  ;;  %p688_p0 = scmp.lt.s32.totalorder %s679_s4, %s679_s4 }
  0x21   : > { %p682_p2 = pnand %p680_p1, %p644_p12  ;;  %p689_p4 = por %p688_p0, %p687_p13 }
  0x23   : > { %p683_p6 = pneg %p682_p2 }
  0x25   : > { %p690_p8 = pnand %p689_p4, %p683_p6 }
  0x27   : > { %693 = shalt.err (!%p690_p8)
}
  0x28   : > { %553 = dma.hbm_to_vmem [thread:$0]  (!%p881_p11), %s1010_s2, 64, %s144_s24, [#allocation7]  }
  0x29   : > { %p25_p1 = scmp.eq.s32.totalorder %s24_s27, 0  ;;  %s27_s7 = sadd.s32 1, %s786_s14 }
  0x2a   : > { %p34_p2 = scmp.ne.s32.totalorder %s786_s14, %s782_s13  ;;  %p35_p4 = scmp.eq.s32.totalorder %s790_s15, 0 }
  0x2b   : > { %s913_s8 = scalar_select %p25_p1, %s786_s14, %s27_s7  }
  0x2c   : > { %p36_p6 = por %p35_p4, %p34_p2  ;;  %p1020_p8 = scmp.eq.s32.totalorder %s853_s16, 1 }
  0x2d   : > { %p564_p12 = scmp.lt.s32.totalorder %s790_s15, 2  ;;  %s154_s10 = sand.u32 1, %s786_s14  }
  0x2e   : > { %p917_p9 = por %p1020_p8, %p34_p2  ;;  %s520_s11 = sshll.u32 %s154_s10, 2 }
  0x2f   : > { %s521_s17 = sshll.u32 %s790_s15, 6  ;;  %s158_s24 = scalar_lea.vmem [#allocation3], %s520_s11 }
  0x30   : > { %s1021_s9 = scalar_select %p917_p9, 1, 0 }
  0x31   : > { %s927_s23 = scalar_lea.hbm %s1008_s0, %s521_s17  ;;  %s165_s25 = sshll.u32 %s158_s24, 4  ;;  %s166_s25 = int_to_ptr.vmem [resolvable:$true] %s165_s25 }
  0x32   : > { %p929_p11 = pnand %p564_p12, %p36_p6  ;;  %s155_s28 = scalar_lea.sflag [#allocation4], %s154_s10 }
  0x33   : > { %s694_s29 = scalar_lea.hbm %s927_s23, 64  ;;  %s699_s5 = scalar_lea.hbm %s1008_s0, 128 }
  0x34   : > { %p695_p3 = scmp.ne.s32.totalorder %s927_s23, %s694_s29  ;;  %p696_p5 = pneg %p929_p11 }
  0x35   : > { %p700_p13 = scmp.lt.s32.totalorder %s927_s23, %s1008_s0  ;;  %p701_p0 = scmp.lt.s32.totalorder %s699_s5, %s694_s29 }
  0x36   : > { %p697_p7 = pnand %p696_p5, %p695_p3 }
  0x37   : > { %p702_p1 = por %p701_p0, %p700_p13 }
  0x38   : > { %p698_p10 = pneg %p697_p7 }
  0x3a   : > { %p703_p2 = pnand %p702_p1, %p698_p10 }
  0x3c   : > { %706 = shalt.err (!%p703_p2)
}
  0x3d   : > { %s707_s11 = scalar_lea.vmem %s166_s25, 64  ;;  %s794_s10 = smov [#allocation3]  }
  0x3e   : > { %p708_p4 = scmp.ne.s32.totalorder %s166_s25, %s707_s11  ;;  %s712_s17 = sshll.u32 %s794_s10, 4  ;;  %s713_s17 = int_to_ptr.vmem [resolvable:$false] %s712_s17 }
  0x3f   : > { %s714_s21 = scalar_lea.vmem %s713_s17, 128  ;;  %p715_p12 = scmp.lt.s32.totalorder %s166_s25, %s713_s17 }
  0x40   : > { %p710_p6 = pnand %p708_p4, %p696_p5  ;;  %p716_p3 = scmp.lt.s32.totalorder %s714_s21, %s707_s11 }
  0x42   : > { %p711_p8 = pneg %p710_p6  ;;  %p717_p7 = por %p716_p3, %p715_p12 }
  0x44   : > { %p718_p9 = pnand %p717_p7, %p711_p8 }
  0x46   : > { %721 = shalt.err (!%p718_p9)
}
  0x47   : > { %557 = dma.hbm_to_vmem [thread:$0]  (!%p929_p11), %s927_s23, 64, %s166_s25, %s155_s28  }
  0x48   : > { %p1023_p10 = scmp.ne.s32.totalorder %s1018_s20, 0 }
  0x49   : > { %s950_s22 = sand.u32 (!%p1023_p10), 1, %s782_s13   ;;  %p1024_p5 = scmp.ne.s32.totalorder (!%p1023_p10), %s1016_s18, 0 }
  0x4a   : > { %174 = sbr.rel (%p1023_p10) target bundleno = 473 (0x1d9), region = 32  ;;  %s523_s24 = sshll.u32 (!%p1023_p10), %s950_s22, 2 }
  0x4b   : > { %s177_s29 = scalar_lea.sflag (!%p1023_p10), [#allocation4], %s950_s22  ;;  %s180_s30 = scalar_lea.vmem (!%p1023_p10), [#allocation3], %s523_s24 }
  0x4f   : > { %765 = dma.done.wait (%p1024_p5), %s177_s29, 64  }
  0x50   : > { %767 = vsyncadd (%p1024_p5), %s177_s29, 4294967232  ;;  %p1025_p9 = scmp.eq.s32.totalorder %s853_s16, 0 }
  0x52   : > { %769 = dma.done.wait (%p1025_p9), [#allocation7], 128   ;;  %p1026_p11 = pmov %p1025_p9 }
  0x53   : > { %v795_v0 = vmov 5   ;;  %v796_v1 = vmov 4   ;;  %vm212_vm0 = vcmask 3072   ;;  %vm214_vm1 = vcmask 142472   ;;  %v964_v3 = vld [vmem:[%s180_s30] sm:$0xf] }
  0x54   : > { %771 = vsyncadd (%p1026_p11), [#allocation7], 4294967168  ;;  %619 = vset.pattern.permute.xlu1 %v795_v0  ;;  %618 = vset.pattern.permute.xlu0 %v796_v1  ;;  %v797_v2 = vmov 0.0   ;;  %v216_v4 = vld [vmem:[#allocation6] sm:$0xf]  ;;  %s798_s18 = smov 1  }
  0x55   : > { %213 = vst.msk [vmem:[#allocation2] sm:$0xf] %vm212_vm0, %v797_v2  ;;  %219 = vrot.lane.b32.xlu0 %v964_v3, %s798_s18  ;;  %280 = vperm.xlu1 %619, %v216_v4   ;;  %v799_v5 = vmov 6   ;;  %v800_v6 = vmov 8   ;;  %v801_v7 = vmov 7   ;;  %v802_v8 = vmov 11  }
  0x56   : > { %215 = vst.msk [vmem:[#allocation2] sm:$0xf] %vm214_vm1, %v797_v2  ;;  %v803_v9 = vmov 9   ;;  %v804_v10 = vmov 2   ;;  %v805_v11 = vmov 10   ;;  %v806_v12 = vmov 1  }
  0x57   : > { %v807_v13 = vmov 0   ;;  %v808_v14 = vmov 3   ;;  %vm222_vm2 = vcmask 134152   ;;  %s809_s20 = smov 127   ;;  %s810_s23 = smov 126   ;;  %vm355_vm3 = vcmask 125952  }
  0x58   : > { %v211_v32 = vld [vmem:[#allocation8] sm:$0xf]  ;;  %s532_s25 = sshll.u32 %s853_s16, 6  ;;  %s210_s27 = scalar_lea.vmem [#allocation9], %s523_s24 }
  0x59   : > { %620 = vset.pattern.permute.xlu1 %v799_v5  ;;  %270 = vperm.xlu0 %618, %v216_v4   ;;  %s426_s28 = sshll.u32 %s210_s27, 4  ;;  %s424_s6 = scalar_lea.hbm %s1011_s3, %s532_s25  ;;  %s427_s28 = int_to_ptr.vmem [resolvable:$true] %s426_s28 }
  0x5a   : > { %290 = vperm.xlu1 %620, %v216_v4   ;;  %s413_s7 = scalar_lea.sflag [#allocation5], %s950_s22  ;;  %s722_s11 = scalar_lea.vmem %s427_s28, 64 }
  0x5b   : > { %p723_p13 = scmp.ne.s32.totalorder %s427_s28, %s722_s11  ;;  %p1027_p0 = scmp.ne.s32.totalorder %s1021_s9, 0 }
  0x5c   : > { %s811_s16 = smov [#allocation9]  }
  0x5d   : > { %622 = vset.pattern.permute.xlu0 %v800_v6  ;;  %p724_p1 = pnand %p723_p13, %p1027_p0  ;;  %s726_s10 = sshll.u32 %s811_s16, 4  ;;  %s727_s10 = int_to_ptr.vmem [resolvable:$false] %s726_s10 }
  0x5e   : > { %621 = vset.pattern.permute.xlu1 %v801_v7  ;;  %310 = vperm.xlu0 %622, %v216_v4   ;;  %s728_s17 = scalar_lea.vmem %s727_s10, 128  ;;  %p729_p4 = scmp.lt.s32.totalorder %s427_s28, %s727_s10 }
  0x5f   : > { %300 = vperm.xlu1 %621, %v216_v4   ;;  %p725_p2 = pneg %p724_p1  ;;  %p730_p6 = scmp.lt.s32.totalorder %s728_s17, %s722_s11 }
  0x61   : > { %p731_p8 = por %p730_p6, %p729_p4 }
  0x62   : > { %625 = vset.pattern.permute.xlu0 %v802_v8 }
  0x63   : > { %623 = vset.pattern.permute.xlu1 %v803_v9  ;;  %340 = vperm.xlu0 %625, %v216_v4   ;;  %p732_p12 = pnand %p731_p8, %p725_p2 }
  0x64   : > { %320 = vperm.xlu1 %623, %v216_v4  }
  0x67   : > { %628 = vset.pattern.permute.xlu0 %v804_v10 }
  0x68   : > { %624 = vset.pattern.permute.xlu1 %v805_v11  ;;  %249 = vperm.xlu0 %628, %v216_v4  }
  0x69   : > { %330 = vperm.xlu1 %624, %v216_v4  }
  0x6c   : > { %631 = vset.pattern.permute.xlu0 %v806_v12 }
  0x6d   : > { %626 = vset.pattern.permute.xlu1 %v807_v13 }
  0x6e   : > { %227 = vperm.xlu1 %626, %v216_v4  }
  0x72   : > { %627 = vset.pattern.permute.xlu1 %v806_v12 }
  0x73   : > { %238 = vperm.xlu1 %627, %v216_v4  }
  0x77   : > { %629 = vset.pattern.permute.xlu1 %v808_v14 }
  0x78   : > { %260 = vperm.xlu1 %629, %v216_v4  }
  0x7c   : > { %630 = vset.pattern.permute.xlu1 %v807_v13 }
  0xc7   : > { %v220_v15 = vpop.permute.xlu0 %219 }
  0xc8   : > { %223 = vst.msk [vmem:[#allocation2] sm:$0xf] %vm222_vm2, %v220_v15 }
  0xcf   : > { %v528_v16 = vld [vmem:[#allocation2 + $0x1] ss:$0 sm:$0xff]  ;;  %v527_v20 = vld [vmem:[#allocation2] ss:$0 sm:$0xff]  ;;  %v529_v23 = vld [vmem:[#allocation2 + $0x2] ss:$0 sm:$0xff] }
  0xd0   : > { %v281_v17 = vpop.permute.xlu1 %280  ;;  %v530_v27 = vld [vmem:[#allocation2 + $0x3] ss:$0 sm:$0xff] }
  0xd1   : > { %v283_v18 = vmul.f32 %v528_v16, %v281_v17 }
  0xd3   : > { %285 = vrot.lane.b32.xlu0 %v283_v18, %s809_s20 }
  0xd4   : > { %v271_v19 = vpop.permute.xlu0 %270 }
  0xd5   : > { %v273_v21 = vmul.f32 %v527_v20, %v271_v19  ;;  %v291_v22 = vpop.permute.xlu1 %290 }
  0xd6   : > { %v293_v24 = vmul.f32 %v529_v23, %v291_v22 }
  0xd7   : > { %275 = vrot.lane.b32.xlu1 %v273_v21, %s809_s20 }
  0xd9   : > { %v311_v25 = vpop.permute.xlu0 %310 }
  0xda   : > { %v301_v26 = vpop.permute.xlu1 %300  ;;  %v313_v29 = vmul.f32 %v527_v20, %v311_v25 }
  0xdb   : > { %v303_v28 = vmul.f32 %v530_v27, %v301_v26  ;;  %295 = vrot.lane.b32.xlu1 %v293_v24, %s809_s20 }
  0xdd   : > { %305 = vrot.lane.b32.xlu0 %v303_v28, %s809_s20 }
  0xde   : > { %v341_v33 = vpop.permute.xlu0 %340 }
  0xdf   : > { %v321_v30 = vpop.permute.xlu1 %320  ;;  %315 = vrot.lane.b32.xlu1 %v313_v29, %s810_s23  ;;  %v343_v35 = vmul.f32 %v530_v27, %v341_v33 }
  0xe0   : > { %v323_v31 = vmul.f32 %v528_v16, %v321_v30 }
  0xe2   : > { %325 = vrot.lane.b32.xlu0 %v323_v31, %s810_s23 }
  0xe3   : > { %351 = vperm.xlu1 %630, %v211_v32   ;;  %v250_v38 = vpop.permute.xlu0 %249 }
  0xe4   : > { %v331_v34 = vpop.permute.xlu1 %330  ;;  %v256_v42 = vmul.f32 %v529_v23, %v250_v38 }
  0xe5   : > { %v333_v36 = vmul.f32 %v529_v23, %v331_v34 }
  0xe7   : > { %335 = vrot.lane.b32.xlu0 %v333_v36, %s810_s23  ;;  %345 = vrot.lane.b32.xlu1 %v343_v35, %s810_s23 }
  0xe8   : > { %632 = vset.pattern.permute.xlu1 %v804_v10 }
  0xe9   : > { %v228_v37 = vpop.permute.xlu1 %227 }
  0xea   : > { %v234_v40 = vmul.f32 %v527_v20, %v228_v37 }
  0xeb   : > { %381 = vperm.xlu0 %631, %v211_v32   ;;  %386 = vperm.xlu1 %632, %v211_v32  }
  0xee   : > { %v239_v39 = vpop.permute.xlu1 %238 }
  0xef   : > { %v245_v41 = vmul.f32 %v528_v16, %v239_v39  ;;  %633 = vset.pattern.permute.xlu0 %v804_v10 }
  0xf1   : > { %v246_v43 = vadd.f32 %v245_v41, %v234_v40 }
  0xf3   : > { %v261_v44 = vpop.permute.xlu1 %260  ;;  %v257_v45 = vadd.f32 %v256_v42, %v246_v43 }
  0xf4   : > { %v267_v46 = vmul.f32 %v530_v27, %v261_v44 }
  0xf6   : > { %v268_v47 = vadd.f32 %v267_v46, %v257_v45 }
 0x145   : > { %v286_v50 = vpop.permute.xlu0 %285 }
 0x149   : > { %v276_v48 = vpop.permute.xlu1 %275 }
 0x14a   : > { %v278_v49 = vadd.f32 %v276_v48, %v268_v47 }
 0x14c   : > { %v288_v51 = vadd.f32 %v286_v50, %v278_v49 }
 0x14d   : > { %v296_v52 = vpop.permute.xlu1 %295 }
 0x14e   : > { %v298_v54 = vadd.f32 %v296_v52, %v288_v51 }
 0x14f   : > { %v306_v53 = vpop.permute.xlu0 %305 }
 0x150   : > { %v308_v55 = vadd.f32 %v306_v53, %v298_v54 }
 0x151   : > { %v316_v56 = vpop.permute.xlu1 %315 }
 0x152   : > { %v318_v58 = vadd.f32 %v316_v56, %v308_v55 }
 0x154   : > { %v326_v57 = vpop.permute.xlu0 %325 }
 0x155   : > { %v328_v61 = vadd.f32 %v326_v57, %v318_v58 }
 0x159   : > { %v336_v59 = vpop.permute.xlu0 %335 }
 0x15a   : > { %v338_v62 = vadd.f32 %v336_v59, %v328_v61 }
 0x15e   : > { %v352_v60 = vpop.permute.xlu1 %351 }
 0x162   : > { %v346_v63 = vpop.permute.xlu1 %345 }
 0x163   : > { %v348_v0 = vadd.f32 %v346_v63, %v338_v62 }
 0x165   : > { %v354_v1 = vadd.f32 %v352_v60, %v348_v0 }
 0x166   : > { %v382_v25 = vpop.permute.xlu0 %381  ;;  %v387_v27 = vpop.permute.xlu1 %386 }
 0x167   : > { %v356_v2 = vsel %vm355_vm3, %v354_v1, 0.0  ;;  %v365_v4 = vmul.f32 %v354_v1, %v354_v1 }
 0x168   : > { %v357_v5 = vrot.slane %v356_v2, 4 }
 0x169   : > { %v366_v6 = vsel %vm355_vm3, %v365_v4, 0.0 }
 0x16a   : > { %v358_v7 = vadd.f32 %v357_v5, %v356_v2  ;;  %v367_v8 = vrot.slane %v366_v6, 4 }
 0x16c   : > { %v359_v9 = vrot.slane %v358_v7, 2  ;;  %v368_v10 = vadd.f32 %v367_v8, %v366_v6 }
 0x16e   : > { %v369_v11 = vrot.slane %v368_v10, 2  ;;  %v360_v12 = vadd.f32 %v359_v9, %v358_v7 }
 0x170   : > { %v370_v13 = vadd.f32 %v369_v11, %v368_v10  ;;  %v361_v14 = vrot.slane %v360_v12, 1 }
 0x172   : > { %v371_v15 = vrot.slane %v370_v13, 1  ;;  %v362_v16 = vadd.f32 %v361_v14, %v360_v12 }
 0x174   : > { %v364_v17 = vmul.f32 0.25, %v362_v16  ;;  %v372_v18 = vadd.f32 %v371_v15, %v370_v13 }
 0x176   : > { %v373_v19 = vmul.f32 0.25, %v372_v18  ;;  %v374_v20 = vmul.f32 %v364_v17, %v364_v17  ;;  %v376_v23 = vsub.f32 %v354_v1, %v364_v17 }
 0x178   : > { %v375_v21 = vsub.f32 %v373_v19, %v374_v20 }
 0x17a   : > { %v377_v22 = vadd.f32 1e-05, %v375_v21 }
 0x17c   : > { %634 = vrsqrt.f32 %v377_v22 }
 0x189   : > { %v635_v24 = vpop.eup %634 }
 0x18a   : > { %v379_v26 = vmul.f32 %v635_v24, %v376_v23 }
 0x18c   : > { %v384_v28 = vmul.f32 %v382_v25, %v379_v26 }
 0x18e   : > { %v389_v29 = vadd.f32 %v387_v27, %v384_v28 }
 0x190   : > { %v393_v30 = vand.u32 2147483647, %v389_v29  ;;  %v390_v41 = vmax.f32 %v389_v29, 0.0  ;;  %vm391_vm5 = vcmp.ne.f32.partialorder %v389_v29, %v389_v29 }
 0x192   : > { %v394_v31 = vsub.f32 0.0, %v393_v30 }
 0x194   : > { %v395_v32 = vmul.f32 1.442695, %v394_v31 }
 0x196   : > { %636 = vpow2.f32 %v395_v32 }
 0x1a3   : > { %v637_v33 = vpop.eup %636 }
 0x1a4   : > { %v397_v34 = vadd.f32 1.0, %v637_v33  ;;  %v400_v35 = vmul.f32 -0.5, %v637_v33  ;;  %v403_v37 = vand.u32 2147483647, %v637_v33 }
 0x1a6   : > { %638 = vlog2.f32 %v397_v34  ;;  %v401_v36 = vadd.f32 1.0, %v400_v35  ;;  %vm404_vm4 = vcmp.lt.f32.partialorder %v403_v37, 0.0004427343 }
 0x1a8   : > { %v402_v40 = vmul.f32 %v637_v33, %v401_v36 }
 0x1b3   : > { %v639_v38 = vpop.eup %638 }
 0x1b4   : > { %v399_v39 = vmul.f32 0.6931472, %v639_v38 }
 0x1b6   : > { %v405_v42 = vsel %vm404_vm4, %v402_v40, %v399_v39 }
 0x1b7   : > { %v406_v43 = vadd.f32 %v405_v42, %v390_v41 }
 0x1b9   : > { %v407_v44 = vsel %vm391_vm5, %v389_v29, %v406_v43 }
 0x1ba   : > { %640 = vtanh.f32 %v407_v44 }
 0x1c7   : > { %v641_v45 = vpop.eup %640 }
 0x1c8   : > { %v409_v46 = vmul.f32 %v641_v45, %v389_v29 }
 0x1ca   : > { %v410_v47 = vadd.f32 %v409_v46, %v964_v3 }
 0x1cc   : > { %411 = vst.msk [vmem:[%s210_s27] sm:$0xf] %vm355_vm3, %v410_v47 }
 0x1cd   : > { %735 = shalt.err (!%p732_p12)
}
 0x1ce   : > { %s736_s21 = scalar_lea.hbm %s424_s6, 64  ;;  %s740_s29 = scalar_lea.hbm %s1011_s3, 128 }
 0x1cf   : > { %p737_p3 = scmp.ne.s32.totalorder %s424_s6, %s736_s21  ;;  %p741_p5 = scmp.lt.s32.totalorder %s424_s6, %s1011_s3 }
 0x1d0   : > { %p742_p9 = scmp.lt.s32.totalorder %s740_s29, %s736_s21 }
 0x1d1   : > { %p738_p7 = pnand %p737_p3, %p1027_p0 }
 0x1d2   : > { %p743_p11 = por %p742_p9, %p741_p5 }
 0x1d3   : > { %p739_p10 = pneg %p738_p7 }
 0x1d5   : > { %p744_p13 = pnand %p743_p11, %p739_p10 }
 0x1d7   : > { %747 = shalt.err (!%p744_p13)
}
 0x1d8   : > { %545 = dma.vmem_to_hbm [thread:$0]  (%p1027_p0), %s427_s28, 64, %s424_s6, %s413_s7  }
 0x1d9 PF: > { %s438_s20 = sand.u32 1, %s778_s12   ;;  %p1028_p1 = scmp.ne.s32.totalorder %s1017_s19, 0 }
 0x1da   : > { %p1029_p2 = scmp.ge.s32.totalorder %s790_s15, 2  ;;  %s439_s23 = scalar_lea.sflag [#allocation5], %s438_s20 }
 0x1dc   : > { %p559_p4 = pnand %p1029_p2, %p1028_p1 }
 0x1de   : > { %p560_p6 = pneg %p559_p4 }
 0x1e0   : > { %773 = dma.done.wait (%p560_p6), %s439_s23, 64  }
 0x1e1   : > { %775 = vsyncadd (%p560_p6), %s439_s23, 4294967232  ;;  %p17_p8 = scmp.ge.s32.totalorder %s886_s26, 4   ;;  %s1030_s12 = smov %s782_s13 }
 0x1e2   : > { %s1031_s13 = smov %s786_s14  ;;  %s1032_s14 = smov %s913_s8 }
 0x1e3   : > { %s1033_s15 = smov %s886_s26  ;;  %19 = sbr.rel (!%p17_p8) target bundleno = 6 (0x6), region = 85 }
 0x1e8   :  { %444 = vsyncpa [#allocation4], 1 }
 0x1e9   :  { %446 = vsyncpa [#allocation4 + $0x1], 1 }
 0x1ea   :  { %447 = vsyncpa [#allocation7], 1 }
 0x1eb   :  { %448 = vsyncpa [#allocation5], 1 }
 0x1ec   :  { %450 = vsyncpa [#allocation5 + $0x1], 1 }

</bundles_post_ra>
